<compile_context>
chip_gen: v7x
topology: tpu7x:2x2x1
jax: 0.10.0
libtpu: 0.0.40
codegen_flags: <defaults>
</compile_context>

<pallas_src>
import functools

import jax
import jax.numpy as jnp
from jax.experimental import pallas as pl
from jax.experimental.pallas import tpu as pltpu


def ffn_kernel(x_ref, w1_ref, b1_ref, w2_ref, b2_ref, o_ref, acc_ref):
    # x_ref : (tm, d_model)  fp32
    # w1_ref: (d_model, tf)  bf16     b1_ref: (1, tf)       fp32
    # w2_ref: (tf, d_model)  bf16     b2_ref: (1, d_model)  fp32
    # o_ref : (tm, d_model)  out dtype
    # acc_ref: (tm, d_model) fp32 scratch (persists across the dff-reduction axis)
    f = pl.program_id(1)

    @pl.when(f == 0)
    def _init():
        acc_ref[...] = jnp.zeros_like(acc_ref)

    # First matmul: bf16 operands on the MXU, fp32 accumulation.
    x_bf16 = x_ref[...].astype(jnp.bfloat16)
    h = jnp.dot(x_bf16, w1_ref[...], preferred_element_type=jnp.float32)
    # Bias + ReLU in fp32 (exact per-dff-column, so dff chunking is exact).
    h = jnp.maximum(h + b1_ref[...], 0.0)

    # Second matmul for this dff chunk, accumulated in fp32.
    acc_ref[...] += jnp.dot(h.astype(jnp.bfloat16), w2_ref[...],
                            preferred_element_type=jnp.float32)

    @pl.when(f == pl.num_programs(1) - 1)
    def _finalize():
        o_ref[...] = (acc_ref[...] + b2_ref[...]).astype(o_ref.dtype)


def _round_up(x, m):
    return ((x + m - 1) // m) * m


def ffn_pallas(x, w1, b1, w2, b2, *, tm=256, tf=512, out_dtype=None):
    """FFN forward: relu(x @ w1 + b1) @ w2 + b2.

    x : [B, S, d_model] fp32
    w1: [d_model, dff]   b1: [dff]
    w2: [dff, d_model]   b2: [d_model]
    """
    B, S, d_model = x.shape
    dff = w1.shape[1]
    M = B * S
    out_dtype = out_dtype or x.dtype

    # ---- tile selection -----------------------------------------------------
    # Row tile: multiple of 8 (sublane), no larger than the (padded) M.
    tm = max(8, min(tm, _round_up(M, 8)))
    tm = (tm // 8) * 8
    M_pad = _round_up(M, tm)

    # dff chunk: multiple of 128 (lane) that divides dff; fall back to full dff.
    tf = min(tf, dff)
    if tf % 128 != 0 or dff % tf != 0:
        tf = dff

    # ---- operand prep -------------------------------------------------------
    x2 = x.reshape(M, d_model)
    if M_pad != M:
        x2 = jnp.pad(x2, ((0, M_pad - M), (0, 0)))

    w1_bf = w1.astype(jnp.bfloat16)          # bf16 MXU operands, cast once
    w2_bf = w2.astype(jnp.bfloat16)
    b1_2 = b1.reshape(1, dff).astype(jnp.float32)
    b2_2 = b2.reshape(1, d_model).astype(jnp.float32)

    grid = (M_pad // tm, dff // tf)          # (parallel rows, dff reduction)

    # ---- VMEM budget / cost hints -------------------------------------------
    vmem_est = (
        2 * tm * d_model * 4        # x tile (double-buffered, fp32)
        + 2 * d_model * tf * 2      # W1 chunk (bf16)
        + 2 * tf * 4                # b1 chunk
        + 2 * tf * d_model * 2      # W2 chunk (bf16)
        + 2 * d_model * 4           # b2
        + 2 * tm * d_model * 4      # output tile
        + tm * d_model * 4          # fp32 accumulator scratch
        + 2 * tm * tf * 4           # intermediate h (vregs/spill headroom)
    )
    vmem_limit = int(min(max(2 * vmem_est, 32 * 1024 * 1024), 64 * 1024 * 1024))

    flops = 2 * M_pad * d_model * dff * 2    # two matmuls
    bytes_accessed = (
        M_pad * d_model * 4                              # x read
        + (M_pad // tm) * (d_model * dff * 2) * 2        # W1 + W2 streamed per row tile
        + dff * 4 + d_model * 4                          # biases
        + M_pad * d_model * jnp.dtype(out_dtype).itemsize  # output write
    )

    out = pl.pallas_call(
        ffn_kernel,
        out_shape=jax.ShapeDtypeStruct((M_pad, d_model), out_dtype),
        grid_spec=pltpu.PrefetchScalarGridSpec(
            num_scalar_prefetch=0,
            grid=grid,
            in_specs=[
                pl.BlockSpec((tm, d_model), lambda i, f: (i, 0)),     # x tile (const over f)
                pl.BlockSpec((d_model, tf), lambda i, f: (0, f)),     # W1 chunk
                pl.BlockSpec((1, tf), lambda i, f: (0, f)),           # b1 chunk
                pl.BlockSpec((tf, d_model), lambda i, f: (f, 0)),     # W2 chunk
                pl.BlockSpec((1, d_model), lambda i, f: (0, 0)),      # b2 (grid-invariant)
            ],
            out_specs=pl.BlockSpec((tm, d_model), lambda i, f: (i, 0)),
            scratch_shapes=[pltpu.VMEM((tm, d_model), jnp.float32)],
        ),
        compiler_params=pltpu.CompilerParams(
            dimension_semantics=("parallel", "arbitrary"),
            vmem_limit_bytes=vmem_limit,
        ),
        cost_estimate=pl.CostEstimate(
            flops=flops, transcendentals=0, bytes_accessed=int(bytes_accessed)),
    )(x2, w1_bf, b1_2, w2_bf, b2_2)

    return out[:M].reshape(B, S, d_model)


# ---------------------------- references --------------------------------------
def ffn_ref_f32(x, w1, b1, w2, b2):
    h = jnp.maximum(jnp.einsum("bsd,df->bsf", x, w1) + b1, 0.0)
    return jnp.einsum("bsf,fd->bsd", h, w2) + b2


def ffn_ref_bf16(x, w1, b1, w2, b2):
    # Mirrors the kernel's numerics: bf16 MXU operands, fp32 accumulation,
    # fp32 bias adds.
    xb = x.astype(jnp.bfloat16)
    w1b = w1.astype(jnp.bfloat16)
    w2b = w2.astype(jnp.bfloat16)
    h = jnp.einsum("bsd,df->bsf", xb, w1b, preferred_element_type=jnp.float32)
    h = jnp.maximum(h + b1, 0.0)
    y = jnp.einsum("bsf,fd->bsd", h.astype(jnp.bfloat16), w2b,
                   preferred_element_type=jnp.float32)
    return y + b2


if __name__ == "__main__":
    # Small shapes consistent with the Decoder's FFN (d_model/dff scaled down,
    # kept as multiples of 128 for TPU lane alignment). Tiles chosen so the
    # grid has multiple steps on BOTH the row axis and the dff-reduction axis.
    B, S = 4, 16
    d_model, dff = 128, 256
    tm, tf = 32, 128          # grid = (2, 2)

    key = jax.random.PRNGKey(0)
    kx, kw1, kb1, kw2, kb2 = jax.random.split(key, 5)

    x = jax.random.normal(kx, (B, S, d_model), dtype=jnp.float32)
    # Deterministic synthetic parameters (nn.Linear-style uniform init bounds).
    bound1 = 1.0 / (d_model ** 0.5)
    bound2 = 1.0 / (dff ** 0.5)
    w1 = jax.random.uniform(kw1, (d_model, dff), jnp.float32, -bound1, bound1)
    b1 = jax.random.uniform(kb1, (dff,), jnp.float32, -bound1, bound1)
    w2 = jax.random.uniform(kw2, (dff, d_model), jnp.float32, -bound2, bound2)
    b2 = jax.random.uniform(kb2, (d_model,), jnp.float32, -bound2, bound2)

    run = jax.jit(functools.partial(ffn_pallas, tm=tm, tf=tf))
    out = jax.block_until_ready(run(x, w1, b1, w2, b2))

    assert out.shape == (B, S, d_model)
    assert out.dtype == x.dtype

    # Tight check against a reference that mirrors the kernel's bf16/f32 math.
    ref_bf16 = ffn_ref_bf16(x, w1, b1, w2, b2)
    assert jnp.allclose(out, ref_bf16, atol=2e-3, rtol=2e-3), \
        "mismatch vs bf16-emulated reference"

    # Loose sanity check against the full fp32 reference (bf16 operand rounding).
    ref_f32 = ffn_ref_f32(x, w1, b1, w2, b2)
    assert jnp.allclose(out, ref_f32, atol=5e-2, rtol=5e-2), \
        "mismatch vs fp32 reference"

    print("KERNEL_OK")
</pallas_src>

<mosaic_0001>
module attributes {stable_mosaic.version = 11 : i64} {
  func.func @ffn_kernel(%arg0: i32, %arg1: i32, %arg2: memref<32x128xf32, #tpu.memory_space<vmem>>, %arg3: memref<128x128xbf16, #tpu.memory_space<vmem>>, %arg4: memref<1x128xf32, #tpu.memory_space<vmem>>, %arg5: memref<128x128xbf16, #tpu.memory_space<vmem>>, %arg6: memref<1x128xf32, #tpu.memory_space<vmem>>, %arg7: memref<32x128xf32, #tpu.memory_space<vmem>>, %arg8: memref<32x128xf32, #tpu.memory_space<vmem>>) attributes {dimension_semantics = [#tpu.dimension_semantics<parallel>, #tpu.dimension_semantics<arbitrary>], iteration_bounds = array<i64: 2, 2>, scalar_prefetch = 0 : i64, scratch_operands = 1 : i64, tpu.core_type = #tpu.core_type<tc>, window_params = [{transform_indices = @transform_0, window_bounds = array<i64: 32, 128>}, {transform_indices = @transform_1, window_bounds = array<i64: 128, 128>}, {transform_indices = @transform_2, window_bounds = array<i64: 1, 128>}, {transform_indices = @transform_3, window_bounds = array<i64: 128, 128>}, {pipeline_mode = #tpu.pipeline_mode<synchronous>, transform_indices = @transform_4, window_bounds = array<i64: 1, 128>}, {transform_indices = @transform_5, window_bounds = array<i64: 32, 128>}]} {
    %c0_i32 = arith.constant 0 : i32
    %0 = arith.cmpi eq, %arg1, %c0_i32 : i32
    %1 = arith.extui %0 : i1 to i32
    %c0_i32_0 = arith.constant 0 : i32
    %2 = arith.cmpi ne, %1, %c0_i32_0 : i32
    scf.if %2 {
      %cst_15 = arith.constant 0.000000e+00 : f32
      %21 = vector.broadcast %cst_15 : f32 to vector<32x128xf32>
      %c0_16 = arith.constant 0 : index
      %c0_17 = arith.constant 0 : index
      %22 = vector.load %arg8[%c0_16, %c0_17] : memref<32x128xf32, #tpu.memory_space<vmem>>, vector<32x128xf32>
      tpu.vector_store %arg8[%c0_16, %c0_17], %21 {strides = array<i32>} : memref<32x128xf32, #tpu.memory_space<vmem>>, vector<32x128xf32>,
    } else {
    }
    %c0 = arith.constant 0 : index
    %c0_1 = arith.constant 0 : index
    %3 = vector.load %arg2[%c0, %c0_1] : memref<32x128xf32, #tpu.memory_space<vmem>>, vector<32x128xf32>
    %4 = arith.truncf %3 : vector<32x128xf32> to vector<32x128xbf16>
    %c0_2 = arith.constant 0 : index
    %c0_3 = arith.constant 0 : index
    %5 = vector.load %arg3[%c0_2, %c0_3] : memref<128x128xbf16, #tpu.memory_space<vmem>>, vector<128x128xbf16>
    %cst = arith.constant dense<0.000000e+00> : vector<32x128xf32>
    %6 = tpu.matmul %4, %5, %cst {dimension_numbers = #tpu.dot_dimension_numbers<[1], [0], [0], [1], [0, 0, 1, 1], [], []>} : vector<32x128xbf16>, vector<128x128xbf16>, vector<32x128xf32> -> vector<32x128xf32>
    %c0_4 = arith.constant 0 : index
    %c0_5 = arith.constant 0 : index
    %7 = vector.load %arg4[%c0_4, %c0_5] : memref<1x128xf32, #tpu.memory_space<vmem>>, vector<1x128xf32>
    %8 = vector.broadcast %7 : vector<1x128xf32> to vector<32x128xf32>
    %9 = arith.addf %6, %8 : vector<32x128xf32>
    %cst_6 = arith.constant 0.000000e+00 : f32
    %10 = vector.broadcast %cst_6 : f32 to vector<32x128xf32>
    %11 = arith.maximumf %9, %10 : vector<32x128xf32>
    %c0_7 = arith.constant 0 : index
    %c0_8 = arith.constant 0 : index
    %12 = vector.load %arg8[%c0_7, %c0_8] : memref<32x128xf32, #tpu.memory_space<vmem>>, vector<32x128xf32>
    %13 = arith.truncf %11 : vector<32x128xf32> to vector<32x128xbf16>
    %c0_9 = arith.constant 0 : index
    %c0_10 = arith.constant 0 : index
    %14 = vector.load %arg5[%c0_9, %c0_10] : memref<128x128xbf16, #tpu.memory_space<vmem>>, vector<128x128xbf16>
    %cst_11 = arith.constant dense<0.000000e+00> : vector<32x128xf32>
    %15 = tpu.matmul %13, %14, %cst_11 {dimension_numbers = #tpu.dot_dimension_numbers<[1], [0], [0], [1], [0, 0, 1, 1], [], []>} : vector<32x128xbf16>, vector<128x128xbf16>, vector<32x128xf32> -> vector<32x128xf32>
    %16 = arith.addf %12, %15 : vector<32x128xf32>
    %c0_12 = arith.constant 0 : index
    %c0_13 = arith.constant 0 : index
    %17 = vector.load %arg8[%c0_12, %c0_13] : memref<32x128xf32, #tpu.memory_space<vmem>>, vector<32x128xf32>
    tpu.vector_store %arg8[%c0_12, %c0_13], %16 {strides = array<i32>} : memref<32x128xf32, #tpu.memory_space<vmem>>, vector<32x128xf32>,
    %c1_i32 = arith.constant 1 : i32
    %18 = arith.cmpi eq, %arg1, %c1_i32 : i32
    %19 = arith.extui %18 : i1 to i32
    %c0_i32_14 = arith.constant 0 : i32
    %20 = arith.cmpi ne, %19, %c0_i32_14 : i32
    scf.if %20 {
      %c0_15 = arith.constant 0 : index
      %c0_16 = arith.constant 0 : index
      %21 = vector.load %arg8[%c0_15, %c0_16] : memref<32x128xf32, #tpu.memory_space<vmem>>, vector<32x128xf32>
      %c0_17 = arith.constant 0 : index
      %c0_18 = arith.constant 0 : index
      %22 = vector.load %arg6[%c0_17, %c0_18] : memref<1x128xf32, #tpu.memory_space<vmem>>, vector<1x128xf32>
      %23 = vector.broadcast %22 : vector<1x128xf32> to vector<32x128xf32>
      %24 = arith.addf %21, %23 : vector<32x128xf32>
      %c0_19 = arith.constant 0 : index
      %c0_20 = arith.constant 0 : index
      %25 = vector.load %arg7[%c0_19, %c0_20] : memref<32x128xf32, #tpu.memory_space<vmem>>, vector<32x128xf32>
      tpu.vector_store %arg7[%c0_19, %c0_20], %24 {strides = array<i32>} : memref<32x128xf32, #tpu.memory_space<vmem>>, vector<32x128xf32>,
    } else {
    }
    return
  }
  func.func @transform_0(%arg0: i32, %arg1: i32) -> (i32, i32) {
    %c0_i32 = arith.constant 0 : i32
    %c0_i32_0 = arith.constant 0 : i32
    return %arg0, %c0_i32 : i32, i32
  }
  func.func @transform_1(%arg0: i32, %arg1: i32) -> (i32, i32) {
    %c0_i32 = arith.constant 0 : i32
    %c0_i32_0 = arith.constant 0 : i32
    return %c0_i32, %arg1 : i32, i32
  }
  func.func @transform_2(%arg0: i32, %arg1: i32) -> (i32, i32) {
    %c0_i32 = arith.constant 0 : i32
    %c0_i32_0 = arith.constant 0 : i32
    return %c0_i32, %arg1 : i32, i32
  }
  func.func @transform_3(%arg0: i32, %arg1: i32) -> (i32, i32) {
    %c0_i32 = arith.constant 0 : i32
    %c0_i32_0 = arith.constant 0 : i32
    return %arg1, %c0_i32 : i32, i32
  }
  func.func @transform_4(%arg0: i32, %arg1: i32) -> (i32, i32) {
    %c0_i32 = arith.constant 0 : i32
    %c0_i32_0 = arith.constant 0 : i32
    %c0_i32_1 = arith.constant 0 : i32
    return %c0_i32, %c0_i32_0 : i32, i32
  }
  func.func @transform_5(%arg0: i32, %arg1: i32) -> (i32, i32) {
    %c0_i32 = arith.constant 0 : i32
    %c0_i32_0 = arith.constant 0 : i32
    return %arg0, %c0_i32 : i32, i32
  }
}

</mosaic_0001>

<bundles_post_ra>
// kernel: ffn_pallas.1
= control target key start
LH: loop header
LB: loop body
LE: loop exit
PB: predicated region body
PF: predicated region fallthrough
CT: control target
= control target key end

     0   :  { %s1410_s0 = inlined_call_operand.vmem [shape: f32[64,128], index: 0, kind: input, shape index: {}]   ;;  %s1411_s1 = inlined_call_operand.vmem [shape: bf16[128,256], index: 1, kind: input, shape index: {}]   ;;  %s1412_s2 = inlined_call_operand.vmem [shape: f32[1,256], index: 2, kind: input, shape index: {}]   ;;  %s1413_s3 = inlined_call_operand.vmem [shape: bf16[256,128], index: 3, kind: input, shape index: {}]   ;;  %s1414_s4 = inlined_call_operand.vmem [shape: f32[1,128], index: 4, kind: input, shape index: {}]   ;;  %s1415_s5 = inlined_call_operand.hbm [shape: f32[64,128], index: 5, kind: output, shape index: {}]  }
   0x1   :  { %1422 = sst [smem:[#allocation14_spill]] %s1411_s1 }
   0x2   :  { %10 = vsyncpa [#allocation5], 0 }
   0x3   :  { %12 = vsyncpa [#allocation5 + $0x1], 0  ;;  %s1161_s18 = smov 0   ;;  %s1163_s19 = smov 0  }
   0x4   :  { %s1165_s20 = smov 0   ;;  %s1167_s21 = smov 0  }
   0x5   :  { %s1169_s22 = smov 0   ;;  %s1171_s23 = smov 0  }
   0x6   :  { %s1173_s24 = smov 0   ;;  %s1175_s25 = smov 0  }
   0x7   :  { %s1177_s26 = smov 0   ;;  %s1179_s27 = smov 0  }
   0x8 LB: > { %1423 = sst [smem:[#allocation7_spill]] %s1105_s22  ;;  %s810_s28 = sadd.s32 4294967295, %s1125_s27   ;;  %s1125_s27 = sphi %s1179_s27, %s18_s27   ;;  %s1121_s26 = sphi %s1177_s26, %s1441_s26   ;;  %s1117_s25 = sphi %s1175_s25, %s1440_s25   ;;  %s1113_s24 = sphi %s1173_s24, %s1439_s24   ;;  %s1109_s23 = sphi %s1171_s23, %s1438_s23   ;;  %s1105_s22 = sphi %s1169_s22, %s1437_s22   ;;  %s1101_s21 = sphi %s1167_s21, %s1436_s21   ;;  %s1097_s20 = sphi %s1165_s20, %s1444_s20   ;;  %s1093_s19 = sphi %s1163_s19, %s1443_s19   ;;  %s1089_s18 = sphi %s1161_s18, %s1442_s18  }
   0x9   : > { %1424 = sst [smem:[#allocation8_spill]] %s1117_s25  ;;  %s811_s29 = sadd.s32 4294967294, %s1125_s27  }
   0xa   : > { %1425 = sst [smem:[#allocation9_spill]] %s1121_s26  ;;  %s27_s30 = sadd.s32 1, %s1117_s25 }
   0xb   : > { %s30_s6 = sadd.s32 1, %s1121_s26  ;;  %p28_p0 = scmp.ge.s32.totalorder %s27_s30, 2 }
   0xc   : > { %s63_s7 = sadd.s32 1, %s1105_s22  ;;  %p70_p1 = scmp.ne.s32.totalorder %s1105_s22, %s1101_s21 }
   0xd   : > { %p71_p2 = scmp.eq.s32.totalorder %s1125_s27, 0  ;;  %s1446_s30 = smov (%p28_p0, %s27_s30), 0 }
   0xe   : > { %1426 = sst [smem:[#allocation10_spill]] %s1446_s30  ;;  %s1448_s6 = smov (!%p28_p0, %s30_s6), %s1121_s26 }
   0xf   : > { %s60_s8 = ssub.s32 %s1117_s25, %s1446_s30  ;;  %p1224_p3 = por %p71_p2, %p70_p1 }
  0x10   : > { %p32_p4 = scmp.ge.s32.totalorder %s1448_s6, 2  ;;  %p61_p5 = scmp.eq.s32.totalorder %s60_s8, 0 }
  0x11   : > { %s162_s10 = sadd.s32 1, %s1097_s20  ;;  %p172_p6 = scmp.ne.s32.totalorder %s1097_s20, %s1093_s19 }
  0x12   : > { %s1450_s6 = smov (%p32_p4, %s1448_s6), 0  ;;  %p173_p7 = scmp.eq.s32.totalorder %s810_s28, 3 }
  0x13   : > { %1428 = sst [smem:[#allocation11_spill]] %s1450_s6  ;;  %s159_s12 = ssub.s32 %s1121_s26, %s1450_s6 }
  0x14   : > { %s1234_s11 = scalar_select %p61_p5, %s1105_s22, %s63_s7  }
  0x15   : > { %p160_p8 = scmp.eq.s32.totalorder %s159_s12, 0  ;;  %p178_p9 = scmp.ne.s32.totalorder %s1093_s19, %s1089_s18 }
  0x16   : > { %1429 = sst [smem:[#allocation12_spill]] %s1234_s11  ;;  %p1240_p10 = por %p173_p7, %p172_p6 }
  0x17   : > { %p179_p11 = scmp.eq.s32.totalorder %s811_s29, 3  ;;  %p813_p13 = scmp.ge.s32.totalorder %s1125_s27, 4 }
  0x18   : > { %s1245_s14 = scalar_select %p160_p8, %s1097_s20, %s162_s10  }
  0x19   : > { %p1247_p12 = por %p179_p11, %p178_p9  ;;  %198 = sbr.rel (%p813_p13) target bundleno = 52 (0x34), region = 20 }
  0x1a   : > { %1431 = sst [smem:[#allocation13_spill]] %s1245_s14 }
  0x20   : > { %210 = sbr.rel (!%p1224_p3) target bundleno = 52 (0x34), region = 28  ;;  %s212_s16 = sand.u32 (%p1224_p3), 1, %s1105_s22  }
  0x21   : > { %s815_s17 = sshll.u32 (%p1224_p3), %s1117_s25, 2  ;;  %s814_s28 = sshll.u32 (%p1224_p3), %s212_s16, 6 }
  0x22   : > { %s1433_s1 = sld [smem:[#allocation14_spill]] (%p1224_p3)  ;;  %s214_s9 = scalar_lea.vmem (%p1224_p3), [#allocation3], %s814_s28 }
  0x28   : > { %s1259_s29 = scalar_lea.vmem %s1433_s1, %s815_s17 }
  0x29   : > { %v232_v0 = vld [vmem:[%s1259_s29] sm:$0xf]  ;;  %v234_v1 = vld [vmem:[%s1259_s29 + $0x8] sm:$0xf]  ;;  %v236_v2 = vld [vmem:[%s1259_s29 + $0x10] sm:$0xf] }
  0x2a   : > { %233 = vst [vmem:[%s214_s9] sm:$0xf] %v232_v0  ;;  %235 = vst [vmem:[%s214_s9 + $0x4] sm:$0xf] %v234_v1  ;;  %v238_v3 = vld [vmem:[%s1259_s29 + $0x18] sm:$0xf] }
  0x2b   : > { %v240_v4 = vld [vmem:[%s1259_s29 + $0x20] sm:$0xf]  ;;  %237 = vst [vmem:[%s214_s9 + $0x8] sm:$0xf] %v236_v2  ;;  %239 = vst [vmem:[%s214_s9 + $0xc] sm:$0xf] %v238_v3 }
  0x2c   : > { %241 = vst [vmem:[%s214_s9 + $0x10] sm:$0xf] %v240_v4  ;;  %v242_v5 = vld [vmem:[%s1259_s29 + $0x28] sm:$0xf]  ;;  %v244_v6 = vld [vmem:[%s1259_s29 + $0x30] sm:$0xf] }
  0x2d   : > { %v246_v7 = vld [vmem:[%s1259_s29 + $0x38] sm:$0xf]  ;;  %243 = vst [vmem:[%s214_s9 + $0x14] sm:$0xf] %v242_v5  ;;  %245 = vst [vmem:[%s214_s9 + $0x18] sm:$0xf] %v244_v6 }
  0x2e   : > { %247 = vst [vmem:[%s214_s9 + $0x1c] sm:$0xf] %v246_v7  ;;  %v248_v8 = vld [vmem:[%s1259_s29 + $0x40] sm:$0xf]  ;;  %v250_v9 = vld [vmem:[%s1259_s29 + $0x48] sm:$0xf] }
  0x2f   : > { %v252_v10 = vld [vmem:[%s1259_s29 + $0x50] sm:$0xf]  ;;  %249 = vst [vmem:[%s214_s9 + $0x20] sm:$0xf] %v248_v8  ;;  %251 = vst [vmem:[%s214_s9 + $0x24] sm:$0xf] %v250_v9 }
  0x30   : > { %253 = vst [vmem:[%s214_s9 + $0x28] sm:$0xf] %v252_v10  ;;  %v254_v11 = vld [vmem:[%s1259_s29 + $0x58] sm:$0xf]  ;;  %v256_v12 = vld [vmem:[%s1259_s29 + $0x60] sm:$0xf] }
  0x31   : > { %v258_v13 = vld [vmem:[%s1259_s29 + $0x68] sm:$0xf]  ;;  %255 = vst [vmem:[%s214_s9 + $0x2c] sm:$0xf] %v254_v11  ;;  %257 = vst [vmem:[%s214_s9 + $0x30] sm:$0xf] %v256_v12 }
  0x32   : > { %259 = vst [vmem:[%s214_s9 + $0x34] sm:$0xf] %v258_v13  ;;  %v260_v14 = vld [vmem:[%s1259_s29 + $0x70] sm:$0xf]  ;;  %v262_v15 = vld [vmem:[%s1259_s29 + $0x78] sm:$0xf] }
  0x33   : > { %261 = vst [vmem:[%s214_s9 + $0x38] sm:$0xf] %v260_v14  ;;  %263 = vst [vmem:[%s214_s9 + $0x3c] sm:$0xf] %v262_v15 }
  0x34 PF: > { %p816_p0 = scmp.ge.s32.totalorder %s1125_s27, 1  ;;  %p332_p1 = scmp.lt.s32.totalorder %s1125_s27, 5 }
  0x36   : > { %p333_p2 = pnand %p816_p0, %p332_p1 }
  0x37   : > { %s339_s10 = sand.u32 (!%p333_p2), 1, %s1101_s21   ;;  %s1418_s12 = sand.u32 (!%p333_p2), 1, %s1093_s19  }
  0x38   : > { %336 = sbr.rel (%p333_p2) target bundleno = 583 (0x247), region = 77  ;;  %s817_s16 = sshll.u32 (!%p333_p2), %s339_s10, 6 }
  0x39   : > { %s818_s17 = sshll.u32 (!%p333_p2), %s1418_s12, 5  ;;  %s819_s28 = sshll.u32 (!%p333_p2), %s1113_s24, 2 }
  0x3a   : > { %p385_p3 = scmp.lt.s32.totalorder (!%p333_p2), %s1109_s23, 1  ;;  %p380_p4 = scmp.lt.s32.totalorder (!%p333_p2), %s819_s28, 7 }
  0x3b   : > { %s821_s7 = sshll.u32 (!%p333_p2), %s1109_s23, 4  ;;  %s1303_s22 = scalar_lea.vmem (!%p333_p2), [#allocation3], %s817_s16 }
  0x3c   : > { %p389_p5 = scmp.lt.s32.totalorder (!%p333_p2), %s821_s7, 31  ;;  %s1305_s14 = scalar_lea.vmem (!%p333_p2), [#allocation4], %s818_s17 }
  0x3d   : > { %p823_p6 = scmp.ne.s32.totalorder (!%p333_p2), %s1109_s23, 0 }
  0x3f   : > { %s1287_s8 = scalar_select %p385_p3, %s1109_s23, 1 }
  0x40   : > { %s1452_s28 = smov (!%p380_p4, %s819_s28), 7  ;;  %s1454_s7 = smov (!%p389_p5, %s821_s7), 31 }
  0x41   : > { %s387_s1 = scalar_lea.vmem %s1412_s2, %s1287_s8  ;;  %s820_s6 = sshll.u32 %s1452_s28, 3  ;;  %v1127_v16 = vmov (!%p823_p6), 0.0  }
  0x42   : > { %s1296_s10 = scalar_lea.vmem %s1410_s0, %s820_s6  ;;  %s822_s12 = sshll.u32 %s1454_s7, 2  ;;  %400 = vst [vmem:[#allocation2] sm:$0xff] (!%p823_p6), %v1127_v16  ;;  %401 = vst [vmem:[#allocation2 + $0x8] sm:$0xff] (!%p823_p6), %v1127_v16 }
  0x43   : > { %s1301_s11 = scalar_lea.vmem %s1413_s3, %s822_s12  ;;  %399 = sbr.rel (%p823_p6) target bundleno = 74 (0x4a), region = 85  ;;  %402 = vst [vmem:[#allocation2 + $0x10] sm:$0xff] (!%p823_p6), %v1127_v16  ;;  %403 = vst [vmem:[#allocation2 + $0x18] sm:$0xff] (!%p823_p6), %v1127_v16 }
  0x4a PF: > { %v999_v17 = vld [vmem:[%s1303_s22] sm:$0xff]   ;;  %v1000_v18 = vld [vmem:[%s1303_s22 + $0x8] sm:$0xff]   ;;  %v1001_v19 = vld [vmem:[%s1303_s22 + $0x10] sm:$0xff]   ;;  %p841_p7 = scmp.ne.s32.totalorder %s1109_s23, 1 }
  0x4b   : > { %869 = vmatprep.subr.bf16.mxu0 %v999_v17  ;;  %v1002_v20 = vld [vmem:[%s1303_s22 + $0x18] sm:$0xff]   ;;  %v404_v21 = vld [vmem:[%s1296_s10] sm:$0xff]  ;;  %v405_v22 = vld [vmem:[%s1296_s10 + $0x8] sm:$0xff] }
  0x4c   : > { %870 = vmatpush3.bf16.msra.mxu0 %v999_v17  ;;  %v408_v23 = vpack.c.bf16 %v405_v22, %v404_v21  ;;  %v1007_v24 = vld [vmem:[%s1301_s11] sm:$0xff]   ;;  %v1008_v25 = vld [vmem:[%s1301_s11 + $0x8] sm:$0xff]   ;;  %v1009_v27 = vld [vmem:[%s1301_s11 + $0x10] sm:$0xff]  }
  0x4d   : > { %871 = vmatprep.subr.bf16.mxu0 %v1000_v18  ;;  %v1003_v26 = vld [vmem:[%s1303_s22 + $0x20] sm:$0xff]   ;;  %889 = vmatprep.subr.bf16.mxu1 %v1007_v24  ;;  %v1004_v28 = vld [vmem:[%s1303_s22 + $0x28] sm:$0xff]   ;;  %v1010_v29 = vld [vmem:[%s1301_s11 + $0x18] sm:$0xff]  }
  0x4e   : > { %885 = vmatprep.mubr.bf16.mxu0 %v408_v23  ;;  %890 = vmatpush3.bf16.msra.mxu1 %v1007_v24  ;;  %v1005_v30 = vld [vmem:[%s1303_s22 + $0x30] sm:$0xff]   ;;  %v1011_v31 = vld [vmem:[%s1301_s11 + $0x20] sm:$0xff]   ;;  %v1006_v32 = vld [vmem:[%s1303_s22 + $0x38] sm:$0xff]  }
  0x4f   : > { %891 = vmatprep.subr.bf16.mxu1 %v1008_v25  ;;  %v1012_v33 = vld [vmem:[%s1301_s11 + $0x28] sm:$0xff]   ;;  %v406_v34 = vld [vmem:[%s1296_s10 + $0x10] sm:$0xff]  ;;  %v407_v35 = vld [vmem:[%s1296_s10 + $0x18] sm:$0xff] }
  0x50   : > { %872 = vmatpush3.bf16.msra.mxu0 %v1000_v18  ;;  %v409_v36 = vpack.c.bf16 %v407_v35, %v406_v34  ;;  %v1013_v37 = vld [vmem:[%s1301_s11 + $0x30] sm:$0xff]   ;;  %v1014_v38 = vld [vmem:[%s1301_s11 + $0x38] sm:$0xff]   ;;  %v824_v39 = vld [vmem:[%s387_s1] ss:$0 sm:$0xff] }
  0x51   : > { %873 = vmatprep.subr.bf16.mxu0 %v1001_v19  ;;  %v536_v54 = vld [vmem:[#allocation2 + $0x10] sm:$0xff]  ;;  %v534_v55 = vld [vmem:[#allocation2] sm:$0xff]  ;;  %v537_v57 = vld [vmem:[#allocation2 + $0x18] sm:$0xff] }
  0x52   : > { %892 = vmatpush3.bf16.msra.mxu1 %v1008_v25  ;;  %v535_v60 = vld [vmem:[#allocation2 + $0x8] sm:$0xff]  ;;  %v842_v3 = vld [vmem:[%s1414_s4] ss:$0 sm:$0xff] (!%p841_p7) }
  0x53   : > { %893 = vmatprep.subr.bf16.mxu1 %v1009_v27 }
  0x54   : > { %874 = vmatpush3.bf16.msra.mxu0 %v1001_v19 }
  0x55   : > { %875 = vmatprep.subr.bf16.mxu0 %v1002_v20 }
  0x56   : > { %894 = vmatpush3.bf16.msra.mxu1 %v1009_v27 }
  0x57   : > { %895 = vmatprep.subr.bf16.mxu1 %v1010_v29 }
  0x58   : > { %876 = vmatpush3.bf16.msra.mxu0 %v1002_v20 }
  0x59   : > { %877 = vmatprep.subr.bf16.mxu0 %v1003_v26 }
  0x5a   : > { %896 = vmatpush3.bf16.msra.mxu1 %v1010_v29 }
  0x5b   : > { %897 = vmatprep.subr.bf16.mxu1 %v1011_v31 }
  0x5c   : > { %878 = vmatpush3.bf16.msra.mxu0 %v1003_v26 }
  0x5d   : > { %879 = vmatprep.subr.bf16.mxu0 %v1004_v28 }
  0x5e   : > { %898 = vmatpush3.bf16.msra.mxu1 %v1011_v31 }
  0x5f   : > { %899 = vmatprep.subr.bf16.mxu1 %v1012_v33 }
  0x60   : > { %880 = vmatpush3.bf16.msra.mxu0 %v1004_v28 }
  0x61   : > { %881 = vmatprep.subr.bf16.mxu0 %v1005_v30 }
  0x62   : > { %900 = vmatpush3.bf16.msra.mxu1 %v1012_v33 }
  0x63   : > { %901 = vmatprep.subr.bf16.mxu1 %v1013_v37 }
  0x64   : > { %882 = vmatpush3.bf16.msra.mxu0 %v1005_v30 }
  0x65   : > { %883 = vmatprep.subr.bf16.mxu0 %v1006_v32 }
  0x66   : > { %902 = vmatpush3.bf16.msra.mxu1 %v1013_v37 }
  0x67   : > { %903 = vmatprep.subr.bf16.mxu1 %v1014_v38 }
  0x68   : > { %884 = vmatpush3.bf16.msra.mxu0 %v1006_v32 }
  0x6a   : > { %904 = vmatpush3.bf16.msra.mxu1 %v1014_v38 }
  0x6b   : > { %886 = vmatmul.mubr.bf16.vlgmr.msra.gmra.mrb[0].mxu0 %v409_v36 }
 0x13e   : > { %v887_v40 = vpop.f32.mrb[0].mxu0 }
 0x13f   : > { %v524_v41 = vadd.f32 %v887_v40, %v824_v39  ;;  %v515_v42 = vpop.f32.mrb[1].mxu0 }
 0x140   : > { %v516_v43 = vadd.f32 %v824_v39, %v515_v42  ;;  %v888_v44 = vpop.f32.mrb[2].mxu0 }
 0x141   : > { %v527_v45 = vadd.f32 %v888_v44, %v824_v39  ;;  %v518_v46 = vpop.f32.mrb[3].mxu0  ;;  %v532_v48 = vmax.f32 %v524_v41, 0.0 }
 0x142   : > { %v519_v47 = vadd.f32 %v824_v39, %v518_v46  ;;  %v530_v50 = vmax.f32 %v516_v43, 0.0 }
 0x143   : > { %v533_v49 = vmax.f32 %v527_v45, 0.0 }
 0x144   : > { %v531_v51 = vmax.f32 %v519_v47, 0.0 }
 0x145   : > { %v539_v52 = vpack.c.bf16 %v533_v49, %v532_v48 }
 0x146   : > { %v538_v53 = vpack.c.bf16 %v531_v51, %v530_v50 }
 0x148   : > { %905 = vmatprep.mubr.bf16.mxu1 %v538_v53 }
 0x149   : > { %906 = vmatmul.mubr.bf16.vlgmr.msra.gmra.mrb[0].mxu1 %v539_v52 }
 0x21c   : > { %v907_v56 = vpop.f32.mrb[0].mxu1  ;;  %664 = sbr.rel (%p841_p7) target bundleno = 557 (0x22d), region = 89 }
 0x21d   : > { %v655_v58 = vadd.f32 %v907_v56, %v536_v54  ;;  %v638_v59 = vpop.f32.mrb[1].mxu1 }
 0x21e   : > { %v653_v61 = vadd.f32 %v638_v59, %v534_v55  ;;  %v908_v62 = vpop.f32.mrb[2].mxu1 }
 0x21f   : > { %659 = vst [vmem:[#allocation2 + $0x10] sm:$0xff] %v655_v58  ;;  %v656_v63 = vadd.f32 %v908_v62, %v537_v57  ;;  %v641_v0 = vpop.f32.mrb[3].mxu1 }
 0x220   : > { %657 = vst [vmem:[#allocation2] sm:$0xff] %v653_v61  ;;  %v654_v1 = vadd.f32 %v641_v0, %v535_v60 }
 0x221   : > { %660 = vst [vmem:[#allocation2 + $0x18] sm:$0xff] %v656_v63 }
 0x222   : > { %658 = vst [vmem:[#allocation2 + $0x8] sm:$0xff] %v654_v1 }
 0x226   : > { %v667_v7 = vld [vmem:[#allocation2 + $0x10] sm:$0xff] }
 0x227   : > { %v665_v2 = vld [vmem:[#allocation2] sm:$0xff]  ;;  %v678_v9 = vadd.f32 %v842_v3, %v667_v7 }
 0x228   : > { %v676_v5 = vadd.f32 %v842_v3, %v665_v2  ;;  %v668_v8 = vld [vmem:[#allocation2 + $0x18] sm:$0xff] }
 0x229   : > { %v666_v4 = vld [vmem:[#allocation2 + $0x8] sm:$0xff]  ;;  %v679_v10 = vadd.f32 %v842_v3, %v668_v8  ;;  %682 = vst [vmem:[%s1305_s14 + $0x10] sm:$0xff] %v678_v9 }
 0x22a   : > { %v677_v6 = vadd.f32 %v842_v3, %v666_v4  ;;  %680 = vst [vmem:[%s1305_s14] sm:$0xff] %v676_v5 }
 0x22b   : > { %683 = vst [vmem:[%s1305_s14 + $0x18] sm:$0xff] %v679_v10 }
 0x22c   : > { %681 = vst [vmem:[%s1305_s14 + $0x8] sm:$0xff] %v677_v6 }
 0x22d PF: > { %s848_s23 = sshll.u32 %s1113_s24, 9  ;;  %s698_s12 = sshll.u32 %s1305_s14, 4  ;;  %s1348_s12 = int_to_ptr.vmem [resolvable:$true] %s698_s12 }
 0x22e   : > { %s1345_s11 = scalar_lea.hbm %s1415_s5, %s848_s23  ;;  %s1434_s16 = sand.u32 1, %s1093_s19  }
 0x22f   : > { %s1352_s17 = scalar_lea.sflag [#allocation5], %s1434_s16  ;;  %s1015_s28 = scalar_lea.vmem %s1348_s12, 512 }
 0x230   : > { %p1016_p8 = scmp.ne.s32.totalorder %s1348_s12, %s1015_s28  ;;  %s1128_s24 = smov [#allocation4]  }
 0x231   : > { %s1019_s7 = sshll.u32 %s1128_s24, 4  ;;  %s1020_s7 = int_to_ptr.vmem [resolvable:$false] %s1019_s7 }
 0x232   : > { %p1017_p9 = pnand %p1016_p8, %p1240_p10  ;;  %s1021_s8 = scalar_lea.vmem %s1020_s7, 1024 }
 0x233   : > { %p1022_p13 = scmp.lt.s32.totalorder %s1348_s12, %s1020_s7  ;;  %p1023_p0 = scmp.lt.s32.totalorder %s1021_s8, %s1015_s28 }
 0x234   : > { %p1018_p11 = pneg %p1017_p9 }
 0x235   : > { %p1024_p1 = por %p1023_p0, %p1022_p13 }
 0x237   : > { %p1025_p2 = pnand %p1024_p1, %p1018_p11 }
 0x239   : > { %1028 = shalt.err (!%p1025_p2)
}
 0x23a   : > { %s1029_s14 = scalar_lea.hbm %s1345_s11, 512  ;;  %s1033_s21 = scalar_lea.hbm %s1415_s5, 1024 }
 0x23b   : > { %p1030_p3 = scmp.ne.s32.totalorder %s1345_s11, %s1029_s14  ;;  %p1034_p6 = scmp.lt.u32.totalorder %s1345_s11, %s1415_s5 }
 0x23c   : > { %p1035_p7 = scmp.lt.u32.totalorder %s1033_s21, %s1029_s14  ;;  %p1037_p9 = scmp.lt.u32.totalorder %s1029_s14, %s1345_s11 }
 0x23d   : > { %p1031_p4 = pnand %p1030_p3, %p1240_p10 }
 0x23e   : > { %p1036_p8 = por %p1035_p7, %p1034_p6 }
 0x23f   : > { %p1032_p5 = pneg %p1031_p4 }
 0x240   : > { %p1038_p11 = por %p1037_p9, %p1036_p8 }
 0x242   : > { %p1039_p13 = pnand %p1038_p11, %p1032_p5 }
 0x244   : > { %1042 = shalt.err (!%p1039_p13)
}
 0x245   : > { %s1129_s25 = smov 128   ;;  %s1130_s1 = smov 8  }
 0x246   : > { %909 = dma.vmem_to_hbm [thread:$0]  (%p1240_p10), %s1348_s12, 512, %s1345_s11, %s1352_s17, %s1129_s25, %s1129_s25, %s1130_s1  }
 0x247 PF: > { %p915_p0 = scmp.ge.s32.totalorder %s1125_s27, 2  ;;  %s713_s26 = sand.u32 1, %s1089_s18  }
 0x248   : > { %s714_s23 = scalar_lea.sflag [#allocation5], %s713_s26 }
 0x249   : > { %p912_p1 = pnand %p915_p0, %p1247_p12 }
 0x24b   : > { %1084 = dma.done.wait (!%p912_p1), %s714_s23, 512  }
 0x24c   : > { %1086 = vsyncadd (!%p912_p1), %s714_s23, 4294966784  ;;  %s18_s27 = sadd.s32 1, %s1125_s27   ;;  %s1435_s30 = sld [smem:[#allocation13_spill]] }
 0x24d   : > { %p15_p2 = scmp.ge.s32.totalorder %s18_s27, 6   ;;  %s1436_s21 = sld [smem:[#allocation7_spill]] }
 0x24e   : > { %s1437_s22 = sld [smem:[#allocation12_spill]]  ;;  %s1438_s23 = sld [smem:[#allocation8_spill]] }
 0x24f   : > { %s1439_s24 = sld [smem:[#allocation9_spill]]  ;;  %s1440_s25 = sld [smem:[#allocation10_spill]] }
 0x250   : > { %s1441_s26 = sld [smem:[#allocation11_spill]]  ;;  %s1442_s18 = smov %s1093_s19 }
 0x251   : > { %s1443_s19 = smov %s1097_s20  ;;  %17 = sbr.rel (!%p15_p2) target bundleno = 8 (0x8), region = 138 }
 0x252   : > { %s1444_s20 = smov %s1435_s30 }
 0x258   :  { %719 = vsyncpa [#allocation5], 1 }
 0x259   :  { %721 = vsyncpa [#allocation5 + $0x1], 1 }

</bundles_post_ra>
